<compile_context>
chip_gen: v6e
topology: v6e:2x2x1
jax: 0.10.0
libtpu: 0.0.40
codegen_flags: <defaults>
</compile_context>

<pallas_src>
import math
import functools

import jax
import jax.numpy as jnp
from jax import lax
from jax.experimental import pallas as pl
from jax.experimental.pallas import tpu as pltpu

_INV_SQRT2 = 1.0 / math.sqrt(2.0)
_MAX_ROW_TILE = 512


def _round_up(x, m):
    return ((x + m - 1) // m) * m


def _gelu_exact(v):
    # nn.GELU() default = exact erf-based GELU (kept for module fidelity).
    # TODO(synk): switch to tanh-approx GELU (EUP slot) at large batch if
    # bit-level parity with the torch module is not required.
    return 0.5 * v * (1.0 + lax.erf(v * jnp.float32(_INV_SQRT2)))


def gluvae_kernel(x_ref, w_ref, b_ref, eps_ref, out_ref, *, half):
    """One row-tile of the fused GLUVAE forward.

    x_ref   : (tm, K)       bf16
    w_ref   : (K, 2*half)   bf16  lanes [0,L)=W_mu, [half,half+L)=W_lv, rest 0
    b_ref   : (1, 2*half)   f32   same lane layout
    eps_ref : (tm, 2*half)  f32   lanes [0,L)=eps, rest 0
    out_ref : (tm, 4*half)  f32   lane-dense slab [ g | code ]
    """
    width = 2 * half
    # One fused MXU matmul (bf16 operands, f32 accumulate) feeds mu and lv.
    z = jnp.dot(x_ref[...], w_ref[...], preferred_element_type=jnp.float32)
    g = _gelu_exact(z + b_ref[...])                         # (tm, width) f32

    # Bring log_var (lanes [half, half+L)) onto mu's lanes [0, L).
    # shift == width // 2 => rotation direction is irrelevant; runs on the XLU.
    lv_aligned = pltpu.roll(g, shift=half, axis=1)
    code = eps_ref[...] * jnp.exp(0.5 * lv_aligned) + g     # lanes [0,L) valid

    # Two full-lane-width, 128-aligned, unmasked stores.
    out_ref[:, 0:width] = g
    out_ref[:, width:2 * width] = code


def prepare_fused_params(w_mu, b_mu, w_lv, b_lv, compute_dtype=jnp.bfloat16):
    """One-time fused weight prep (hoisted out of the per-forward path).

    Re-run whenever the underlying weights change (e.g. after a train step).
    Weights are cast to bf16 for the MXU; the bias stays f32 (added after the
    f32 accumulate).
    """
    K, L = w_mu.shape
    half = _round_up(L, 64)          # lv offset == half of the fused width
    width = 2 * half                 # multiple of 128
    w_fused = jnp.zeros((K, width), jnp.float32)
    w_fused = w_fused.at[:, 0:L].set(w_mu).at[:, half:half + L].set(w_lv)
    b_fused = jnp.zeros((1, width), jnp.float32)
    b_fused = b_fused.at[0, 0:L].set(b_mu).at[0, half:half + L].set(b_lv)
    return w_fused.astype(compute_dtype), b_fused


@jax.jit
def gluvae_forward(x, w_fused, b_fused, eps):
    """Returns (mu, log_var, code).  x is NCHW; flattened like torch .view(B,-1)."""
    B = x.shape[0]
    x_flat = x.reshape(B, -1).astype(w_fused.dtype)         # bf16 activations
    K = x_flat.shape[1]
    width = w_fused.shape[1]
    half = width // 2
    L = eps.shape[1]

    eps_p = jnp.pad(eps.astype(jnp.float32), ((0, 0), (0, width - L)))

    # Row tiling: full batch in one step when small; 512-row tiles otherwise.
    tile_m = B if B <= _MAX_ROW_TILE else _MAX_ROW_TILE
    grid_m = pl.cdiv(B, tile_m)

    isz = jnp.dtype(w_fused.dtype).itemsize
    cost = pl.CostEstimate(
        flops=int(2 * B * K * width),
        transcendentals=int(2 * B * width),                  # erf + exp
        bytes_accessed=int(B * K * isz + K * width * isz + width * 4
                           + B * width * 4 + B * 2 * width * 4),
    )

    packed = pl.pallas_call(
        functools.partial(gluvae_kernel, half=half),
        out_shape=jax.ShapeDtypeStruct((B, 2 * width), jnp.float32),
        grid=(grid_m,),
        in_specs=[
            pl.BlockSpec((tile_m, K), lambda i: (i, 0)),      # x      (streamed)
            pl.BlockSpec((K, width), lambda i: (0, 0)),       # weight (resident)
            pl.BlockSpec((1, width), lambda i: (0, 0)),       # bias   (resident)
            pl.BlockSpec((tile_m, width), lambda i: (i, 0)),  # eps    (streamed)
        ],
        out_specs=pl.BlockSpec((tile_m, 2 * width), lambda i: (i, 0)),
        compiler_params=pltpu.CompilerParams(
            dimension_semantics=("parallel",)),               # rows split on v7x TCs
        cost_estimate=cost,
    )(x_flat, w_fused, b_fused, eps_p)

    mu = packed[:, 0:L]
    log_var = packed[:, half:half + L]
    code = packed[:, width:width + L]
    return mu, log_var, code


def init_linear_params(key, in_dim, out_dim):
    """torch.nn.Linear default init (uniform +-1/sqrt(in)); stored as (in, out)."""
    kw, kb = jax.random.split(key)
    bound = 1.0 / math.sqrt(in_dim)
    w = jax.random.uniform(kw, (in_dim, out_dim), jnp.float32, -bound, bound)
    b = jax.random.uniform(kb, (out_dim,), jnp.float32, -bound, bound)
    return w, b


def reference_forward(x_flat, w_mu, w_lv, b_mu, b_lv, eps):
    mu = jax.nn.gelu(x_flat @ w_mu + b_mu, approximate=False)
    lv = jax.nn.gelu(x_flat @ w_lv + b_lv, approximate=False)
    code = eps * jnp.exp(0.5 * lv) + mu
    return mu, lv, code


if __name__ == "__main__":
    # Shapes consistent with the module's forward:
    # x: NCHW (B=2, C=4, H=16, W=16) -> flattened input_dim = 1024
    # cfg: add_noise=False, latent_dim=32 -> self.latent_dim = 32
    B, C, H, W = 2, 4, 16, 16
    input_dim = C * H * W
    latent_dim = 32

    key = jax.random.PRNGKey(0)
    kx, kmu, klv, keps = jax.random.split(key, 4)

    x = jax.random.normal(kx, (B, C, H, W), jnp.float32)
    w_mu, b_mu = init_linear_params(kmu, input_dim, latent_dim)
    w_lv, b_lv = init_linear_params(klv, input_dim, latent_dim)

    # eps ~ randn_like(std) — generated in glue JAX for determinism.
    # TODO(synk): could use in-kernel pltpu.prng_seed/prng_random_bits instead
    # if bit-exact parity with jax.random is not required.
    eps = jax.random.normal(keps, (B, latent_dim), jnp.float32)

    # One-time fused / lane-padded weight prep (hoisted out of the call path).
    w_fused, b_fused = prepare_fused_params(w_mu, b_mu, w_lv, b_lv)

    mu, log_var, code = gluvae_forward(x, w_fused, b_fused, eps)
    jax.block_until_ready((mu, log_var, code))

    x_flat = x.reshape(B, -1)

    # (a) tight check against a reference fed the same bf16-rounded operands.
    xq = x_flat.astype(jnp.bfloat16).astype(jnp.float32)
    wmq = w_mu.astype(jnp.bfloat16).astype(jnp.float32)
    wlq = w_lv.astype(jnp.bfloat16).astype(jnp.float32)
    mu_q, lv_q, code_q = reference_forward(xq, wmq, wlq, b_mu, b_lv, eps)
    assert jnp.allclose(mu, mu_q, atol=1e-3, rtol=1e-3)
    assert jnp.allclose(log_var, lv_q, atol=1e-3, rtol=1e-3)
    assert jnp.allclose(code, code_q, atol=1e-3, rtol=1e-3)

    # (b) loose check against the full-f32 module math (bf16 in, f32 accumulate).
    mu_r, lv_r, code_r = reference_forward(x_flat, w_mu, w_lv, b_mu, b_lv, eps)
    assert jnp.allclose(mu, mu_r, atol=5e-2, rtol=5e-2)
    assert jnp.allclose(log_var, lv_r, atol=5e-2, rtol=5e-2)
    assert jnp.allclose(code, code_r, atol=5e-2, rtol=5e-2)

    print("KERNEL_OK")
</pallas_src>

<mosaic_0001>
module attributes {stable_mosaic.version = 11 : i64} {
  func.func @gluvae_kernel(%arg0: i32, %arg1: memref<2x1024xbf16, #tpu.memory_space<vmem>>, %arg2: memref<1024x128xbf16, #tpu.memory_space<vmem>>, %arg3: memref<1x128xf32, #tpu.memory_space<vmem>>, %arg4: memref<2x128xf32, #tpu.memory_space<vmem>>, %arg5: memref<2x256xf32, #tpu.memory_space<vmem>>) attributes {dimension_semantics = [#tpu.dimension_semantics<parallel>], iteration_bounds = array<i64: 1>, scalar_prefetch = 0 : i64, scratch_operands = 0 : i64, tpu.core_type = #tpu.core_type<tc>, window_params = [{transform_indices = @transform_0, window_bounds = array<i64: 2, 1024>}, {pipeline_mode = #tpu.pipeline_mode<synchronous>, transform_indices = @transform_1, window_bounds = array<i64: 1024, 128>}, {pipeline_mode = #tpu.pipeline_mode<synchronous>, transform_indices = @transform_2, window_bounds = array<i64: 1, 128>}, {transform_indices = @transform_3, window_bounds = array<i64: 2, 128>}, {transform_indices = @transform_4, window_bounds = array<i64: 2, 256>}]} {
    %c0 = arith.constant 0 : index
    %c0_0 = arith.constant 0 : index
    %0 = vector.load %arg1[%c0, %c0_0] : memref<2x1024xbf16, #tpu.memory_space<vmem>>, vector<2x1024xbf16>
    %c0_1 = arith.constant 0 : index
    %c0_2 = arith.constant 0 : index
    %1 = vector.load %arg2[%c0_1, %c0_2] : memref<1024x128xbf16, #tpu.memory_space<vmem>>, vector<1024x128xbf16>
    %cst = arith.constant dense<0.000000e+00> : vector<2x128xf32>
    %2 = tpu.matmul %0, %1, %cst {dimension_numbers = #tpu.dot_dimension_numbers<[1], [0], [0], [1], [0, 0, 1, 1], [], []>} : vector<2x1024xbf16>, vector<1024x128xbf16>, vector<2x128xf32> -> vector<2x128xf32>
    %c0_3 = arith.constant 0 : index
    %c0_4 = arith.constant 0 : index
    %3 = vector.load %arg3[%c0_3, %c0_4] : memref<1x128xf32, #tpu.memory_space<vmem>>, vector<1x128xf32>
    %4 = vector.broadcast %3 : vector<1x128xf32> to vector<2x128xf32>
    %5 = arith.addf %2, %4 : vector<2x128xf32>
    %cst_5 = arith.constant 5.000000e-01 : f32
    %6 = vector.broadcast %cst_5 : f32 to vector<2x128xf32>
    %7 = arith.mulf %6, %5 : vector<2x128xf32>
    %cst_6 = arith.constant 0.707106769 : f32
    %8 = vector.broadcast %cst_6 : f32 to vector<2x128xf32>
    %9 = arith.mulf %5, %8 : vector<2x128xf32>
    %10 = math.erf %9 : vector<2x128xf32>
    %cst_7 = arith.constant 1.000000e+00 : f32
    %11 = vector.broadcast %cst_7 : f32 to vector<2x128xf32>
    %12 = arith.addf %11, %10 : vector<2x128xf32>
    %13 = arith.mulf %7, %12 : vector<2x128xf32>
    %c64_i32 = arith.constant 64 : i32
    %14 = tpu.dynamic_rotate %13 by %c64_i32 dim 1 : vector<2x128xf32>, i32 -> vector<2x128xf32>
    %c0_8 = arith.constant 0 : index
    %c0_9 = arith.constant 0 : index
    %15 = vector.load %arg4[%c0_8, %c0_9] : memref<2x128xf32, #tpu.memory_space<vmem>>, vector<2x128xf32>
    %cst_10 = arith.constant 5.000000e-01 : f32
    %16 = vector.broadcast %cst_10 : f32 to vector<2x128xf32>
    %17 = arith.mulf %16, %14 : vector<2x128xf32>
    %18 = math.exp %17 : vector<2x128xf32>
    %19 = arith.mulf %15, %18 : vector<2x128xf32>
    %20 = arith.addf %19, %13 : vector<2x128xf32>
    %c0_11 = arith.constant 0 : index
    %c0_12 = arith.constant 0 : index
    %21 = vector.load %arg5[%c0_11, %c0_12] : memref<2x256xf32, #tpu.memory_space<vmem>>, vector<2x128xf32>
    tpu.vector_store %arg5[%c0_11, %c0_12], %13 {strides = array<i32>} : memref<2x256xf32, #tpu.memory_space<vmem>>, vector<2x128xf32>,
    %c0_13 = arith.constant 0 : index
    %c128 = arith.constant 128 : index
    %22 = vector.load %arg5[%c0_13, %c128] : memref<2x256xf32, #tpu.memory_space<vmem>>, vector<2x128xf32>
    tpu.vector_store %arg5[%c0_13, %c128], %20 {strides = array<i32>} : memref<2x256xf32, #tpu.memory_space<vmem>>, vector<2x128xf32>,
    return
  }
  func.func @transform_0(%arg0: i32) -> (i32, i32) {
    %c0_i32 = arith.constant 0 : i32
    %c0_i32_0 = arith.constant 0 : i32
    return %arg0, %c0_i32 : i32, i32
  }
  func.func @transform_1(%arg0: i32) -> (i32, i32) {
    %c0_i32 = arith.constant 0 : i32
    %c0_i32_0 = arith.constant 0 : i32
    %c0_i32_1 = arith.constant 0 : i32
    return %c0_i32, %c0_i32_0 : i32, i32
  }
  func.func @transform_2(%arg0: i32) -> (i32, i32) {
    %c0_i32 = arith.constant 0 : i32
    %c0_i32_0 = arith.constant 0 : i32
    %c0_i32_1 = arith.constant 0 : i32
    return %c0_i32, %c0_i32_0 : i32, i32
  }
  func.func @transform_3(%arg0: i32) -> (i32, i32) {
    %c0_i32 = arith.constant 0 : i32
    %c0_i32_0 = arith.constant 0 : i32
    return %arg0, %c0_i32 : i32, i32
  }
  func.func @transform_4(%arg0: i32) -> (i32, i32) {
    %c0_i32 = arith.constant 0 : i32
    %c0_i32_0 = arith.constant 0 : i32
    return %arg0, %c0_i32 : i32, i32
  }
}

</mosaic_0001>

<bundles_post_ra>
// kernel: gluvae_forward.1
= control target key start
LH: loop header
LB: loop body
LE: loop exit
PB: predicated region body
PF: predicated region fallthrough
CT: control target
= control target key end

     0   :  { %9 = vsyncpa [#allocation3], 0  ;;  %s1038_s15 = smov [#allocation2]   ;;  %s1101_s0 = inlined_call_operand.vmem [shape: bf16[2,1024], index: 0, kind: input, shape index: {}]   ;;  %s1102_s1 = inlined_call_operand.hbm [shape: bf16[1024,128], index: 1, kind: input, shape index: {}]   ;;  %s1103_s2 = inlined_call_operand.vmem [shape: f32[1,128], index: 2, kind: input, shape index: {}]   ;;  %s1104_s3 = inlined_call_operand.vmem [shape: f32[2,128], index: 3, kind: input, shape index: {}]   ;;  %s1105_s4 = inlined_call_operand.vmem [shape: f32[2,256], index: 4, kind: output, shape index: {}]  }
   0x1   :  { %s17_s16 = sshll.u32 %s1038_s15, 4  ;;  %s18_s16 = int_to_ptr.vmem [resolvable:$true] %s17_s16 }
   0x2   :  { %s1024_s17 = scalar_lea.vmem %s18_s16, 8192  ;;  %p1029_p1 = scmp.lt.s32.totalorder %s18_s16, %s18_s16 }
   0x3   :  { %p1025_p0 = scmp.ne.s32.totalorder %s18_s16, %s1024_s17  ;;  %p1030_p2 = scmp.lt.s32.totalorder %s1024_s17, %s1024_s17 }
   0x5   :  { %p1031_p3 = por %p1030_p2, %p1029_p1 }
   0x7   :  { %p1032_p4 = pnand %p1031_p3, %p1025_p0 }
   0x9   :  { %1035 = shalt.err (!%p1032_p4)
}
   0xa   :  { %s1039_s18 = smov 64   ;;  %s1040_s19 = smov 4  }
   0xb   :  { %23 = dma.hbm_to_vmem [thread:$0]  %s1102_s1, 8192, %s18_s16, [#allocation3], %s1039_s18, %s1039_s18, %s1040_s19  }
   0xc   :  { %1036 = dma.done.wait [#allocation3], 8192  }
   0xd   :  { %1037 = vsyncadd [#allocation3], 4294959104  ;;  %v947_v0 = vld [vmem:[#allocation2 + $0x78] sm:$0xff]   ;;  %v951_v4 = vld [vmem:[#allocation2 + $0x70] sm:$0xff]   ;;  %v1041_v22 = vmov 1966171168   ;;  %v173_v24 = vlaneseq }
   0xe   :  { %v948_v1 = vld [vmem:[#allocation2 + $0xf8] sm:$0xff]   ;;  %855 = vmatprep.subr.bf16.mxu0 %v947_v0  ;;  %v952_v5 = vld [vmem:[#allocation2 + $0xf0] sm:$0xff]   ;;  %v955_v8 = vld [vmem:[#allocation2 + $0x68] sm:$0xff]   ;;  %v171_v23 = vunpack.c.l.s4 %v1041_v22 }
   0xf   :  { %v949_v2 = vld [vmem:[#allocation2 + $0x38] sm:$0xff]   ;;  %877 = vmatprep.subr.bf16.mxu1 %v948_v1  ;;  %v953_v6 = vld [vmem:[#allocation2 + $0x30] sm:$0xff]   ;;  %v956_v9 = vld [vmem:[#allocation2 + $0xe8] sm:$0xff]   ;;  %v174_v30 = vshrl.u32 %v173_v24, 7 }
  0x10   :  { %v950_v3 = vld [vmem:[#allocation2 + $0xb8] sm:$0xff]   ;;  %856 = vmatpush3.bf16.msra.mxu0 %v949_v2  ;;  %v954_v7 = vld [vmem:[#allocation2 + $0xb0] sm:$0xff]   ;;  %v957_v10 = vld [vmem:[#allocation2 + $0x28] sm:$0xff]   ;;  %v172_v29 = vunpack.c.0.s8 %v171_v23 }
  0x11   :  { %878 = vmatpush3.bf16.msra.mxu1 %v950_v3  ;;  %857 = vmatprep.subr.bf16.mxu0 %v951_v4  ;;  %v958_v11 = vld [vmem:[#allocation2 + $0xa8] sm:$0xff]   ;;  %v959_v12 = vld [vmem:[#allocation2 + $0x60] sm:$0xff]   ;;  %v963_v16 = vld [vmem:[#allocation2 + $0x58] sm:$0xff]  }
  0x12   :  { %879 = vmatprep.subr.bf16.mxu1 %v952_v5  ;;  %v960_v13 = vld [vmem:[#allocation2 + $0xe0] sm:$0xff]   ;;  %v964_v17 = vld [vmem:[#allocation2 + $0xd8] sm:$0xff]   ;;  %v967_v20 = vld [vmem:[#allocation2 + $0x50] sm:$0xff]   ;;  %v1072_v35 = vsub.s32 %v172_v29, %v174_v30 }
  0x13   :  { %v961_v14 = vld [vmem:[#allocation2 + $0x20] sm:$0xff]   ;;  %v965_v18 = vld [vmem:[#allocation2 + $0x18] sm:$0xff]   ;;  %v968_v21 = vld [vmem:[#allocation2 + $0xd0] sm:$0xff]  }
  0x14   :  { %858 = vmatpush3.bf16.msra.mxu0 %v953_v6  ;;  %v962_v15 = vld [vmem:[#allocation2 + $0xa0] sm:$0xff]   ;;  %v966_v19 = vld [vmem:[#allocation2 + $0x98] sm:$0xff]   ;;  %v969_v25 = vld [vmem:[#allocation2 + $0x10] sm:$0xff]  }
  0x15   :  { %880 = vmatpush3.bf16.msra.mxu1 %v954_v7  ;;  %859 = vmatprep.subr.bf16.mxu0 %v955_v8  ;;  %v970_v26 = vld [vmem:[#allocation2 + $0x90] sm:$0xff]   ;;  %v971_v27 = vld [vmem:[#allocation2 + $0x48] sm:$0xff]   ;;  %v975_v33 = vld [vmem:[#allocation2 + $0x40] sm:$0xff]  }
  0x16   :  { %881 = vmatprep.subr.bf16.mxu1 %v956_v9  ;;  %v972_v28 = vld [vmem:[#allocation2 + $0xc8] sm:$0xff]   ;;  %v976_v34 = vld [vmem:[#allocation2 + $0xc0] sm:$0xff]   ;;  %v980_v41 = vld [vmem:[#allocation2 + $0x178] sm:$0xff]  }
  0x17   :  { %v973_v31 = vld [vmem:[#allocation2 + $0x8] sm:$0xff]   ;;  %v977_v36 = vld [vmem:[#allocation2] sm:$0xff]   ;;  %v981_v42 = vld [vmem:[#allocation2 + $0x1f8] sm:$0xff]  }
  0x18   :  { %860 = vmatpush3.bf16.msra.mxu0 %v957_v10  ;;  %v974_v32 = vld [vmem:[#allocation2 + $0x88] sm:$0xff]   ;;  %v978_v37 = vld [vmem:[#allocation2 + $0x80] sm:$0xff]   ;;  %v982_v47 = vld [vmem:[#allocation2 + $0x138] sm:$0xff]  }
  0x19   :  { %882 = vmatpush3.bf16.msra.mxu1 %v958_v11  ;;  %861 = vmatprep.subr.bf16.mxu0 %v959_v12  ;;  %v32_v38 = vld [vmem:[%s1101_s0] sm:$0xff]  ;;  %v984_v50 = vld [vmem:[#allocation2 + $0x170] sm:$0xff]   ;;  %v983_v52 = vld [vmem:[#allocation2 + $0x1b8] sm:$0xff]  }
  0x1a   :  { %883 = vmatprep.subr.bf16.mxu1 %v960_v13  ;;  %v169_v39 = vcombine.high %v32_v38, %v32_v38  ;;  %v176_v40 = vrot.slane %v32_v38, %v1072_v35  ;;  %v985_v54 = vld [vmem:[#allocation2 + $0x1f0] sm:$0xff]   ;;  %v988_v57 = vld [vmem:[#allocation2 + $0x168] sm:$0xff]   ;;  %v992_v61 = vld [vmem:[#allocation2 + $0x160] sm:$0xff]  }
  0x1b   :  { %v986_v55 = vld [vmem:[#allocation2 + $0x130] sm:$0xff]   ;;  %v989_v59 = vld [vmem:[#allocation2 + $0x1e8] sm:$0xff]   ;;  %v993_v63 = vld [vmem:[#allocation2 + $0x1e0] sm:$0xff]  }
  0x1c   :  { %862 = vmatpush3.bf16.msra.mxu0 %v961_v14  ;;  %v184_v43 = vcombine.high %v176_v40, %v176_v40  ;;  %v192_v44 = vrot.slane %v176_v40, %v1072_v35  ;;  %v1080_v45 = vrot.slane %v169_v39, %v1072_v35  ;;  %v987_v58 = vld [vmem:[#allocation2 + $0x1b0] sm:$0xff]   ;;  %v990_v60 = vld [vmem:[#allocation2 + $0x128] sm:$0xff]   ;;  %v994_v0 = vld [vmem:[#allocation2 + $0x120] sm:$0xff]  }
  0x1d   :  { %884 = vmatpush3.bf16.msra.mxu1 %v962_v15  ;;  %863 = vmatprep.subr.bf16.mxu0 %v963_v16  ;;  %v991_v62 = vld [vmem:[#allocation2 + $0x1a8] sm:$0xff]   ;;  %v996_v1 = vld [vmem:[#allocation2 + $0x158] sm:$0xff]   ;;  %v995_v2 = vld [vmem:[#allocation2 + $0x1a0] sm:$0xff]  }
  0x1e   :  { %885 = vmatprep.subr.bf16.mxu1 %v964_v17  ;;  %v206_v46 = vrot.slane %v184_v43, %v1072_v35  ;;  %v185_v48 = vcombine.high %v1080_v45, %v1080_v45  ;;  %v214_v49 = vcombine.high %v192_v44, %v192_v44  ;;  %v997_v3 = vld [vmem:[#allocation2 + $0x1d8] sm:$0xff]   ;;  %v1000_v5 = vld [vmem:[#allocation2 + $0x150] sm:$0xff]   ;;  %v1004_v9 = vld [vmem:[#allocation2 + $0x148] sm:$0xff]   ;;  %v199_v17 = vrot.slane %v1080_v45, %v1072_v35 }
  0x1f   :  { %v998_v4 = vld [vmem:[#allocation2 + $0x118] sm:$0xff]   ;;  %v1001_v7 = vld [vmem:[#allocation2 + $0x1d0] sm:$0xff]   ;;  %v1005_v11 = vld [vmem:[#allocation2 + $0x1c8] sm:$0xff]  }
  0x20   :  { %864 = vmatpush3.bf16.msra.mxu0 %v965_v18  ;;  %642 = vmatprep.mubr.bf16.mxu0 %v206_v46  ;;  %v216_v51 = vcombine.high %v206_v46, %v206_v46  ;;  %v213_v53 = vrot.slane %v185_v48, %v1072_v35  ;;  %v999_v6 = vld [vmem:[#allocation2 + $0x198] sm:$0xff]   ;;  %v1002_v8 = vld [vmem:[#allocation2 + $0x110] sm:$0xff]   ;;  %v1006_v12 = vld [vmem:[#allocation2 + $0x108] sm:$0xff]  }
  0x21   :  { %886 = vmatpush3.bf16.msra.mxu1 %v966_v19  ;;  %865 = vmatprep.subr.bf16.mxu0 %v967_v20  ;;  %v1003_v10 = vld [vmem:[#allocation2 + $0x190] sm:$0xff]   ;;  %v1008_v13 = vld [vmem:[#allocation2 + $0x140] sm:$0xff]   ;;  %v1007_v14 = vld [vmem:[#allocation2 + $0x188] sm:$0xff]   ;;  %v215_v19 = vcombine.high %v199_v17, %v199_v17 }
  0x22   :  { %887 = vmatprep.subr.bf16.mxu1 %v968_v21  ;;  %682 = vmatprep.mubr.bf16.mxu1 %v216_v51  ;;  %v217_v56 = vcombine.high %v213_v53, %v213_v53  ;;  %v1009_v15 = vld [vmem:[#allocation2 + $0x1c0] sm:$0xff]  }
  0x23   :  { %v1010_v16 = vld [vmem:[#allocation2 + $0x100] sm:$0xff]  }
  0x24   :  { %866 = vmatpush3.bf16.msra.mxu0 %v969_v25  ;;  %v1011_v18 = vld [vmem:[#allocation2 + $0x180] sm:$0xff]  }
  0x25   :  { %888 = vmatpush3.bf16.msra.mxu1 %v970_v26  ;;  %867 = vmatprep.subr.bf16.mxu0 %v971_v27  ;;  %v790_v29 = vld [vmem:[%s1103_s2] ss:$0 sm:$0xff] }
  0x26   :  { %889 = vmatprep.subr.bf16.mxu1 %v972_v28 }
  0x28   :  { %868 = vmatpush3.bf16.msra.mxu0 %v973_v31 }
  0x29   :  { %890 = vmatpush3.bf16.msra.mxu1 %v974_v32  ;;  %869 = vmatprep.subr.bf16.mxu0 %v975_v33 }
  0x2a   :  { %891 = vmatprep.subr.bf16.mxu1 %v976_v34 }
  0x2c   :  { %870 = vmatpush3.bf16.msra.mxu0 %v977_v36 }
  0x2d   :  { %892 = vmatpush3.bf16.msra.mxu1 %v978_v37  ;;  %899 = vmatprep.subr.bf16.mxu0 %v980_v41 }
  0x2e   :  { %921 = vmatprep.subr.bf16.mxu1 %v981_v42 }
  0x2f   :  { %643 = vmatmul.mubr.bf16.vlgmr.msra.gmra.mxu0 %v192_v44 }
  0x30   :  { %900 = vmatpush3.bf16.msra.mxu0 %v982_v47  ;;  %683 = vmatmul.mubr.bf16.vlgmr.msra.gmra.mxu1 %v214_v49 }
  0x31   :  { %901 = vmatprep.subr.bf16.mxu0 %v984_v50  ;;  %922 = vmatpush3.bf16.msra.mxu1 %v983_v52 }
  0x32   :  { %722 = vmatprep.mubr.bf16.mxu0 %v213_v53  ;;  %923 = vmatprep.subr.bf16.mxu1 %v985_v54  ;;  %v777_v53 = vld [vmem:[%s1104_s3] sm:$0x3] }
  0x33   :  { %762 = vmatprep.mubr.bf16.mxu1 %v217_v56 }
  0x34   :  { %902 = vmatpush3.bf16.msra.mxu0 %v986_v55 }
  0x35   :  { %903 = vmatprep.subr.bf16.mxu0 %v988_v57  ;;  %924 = vmatpush3.bf16.msra.mxu1 %v987_v58 }
  0x36   :  { %925 = vmatprep.subr.bf16.mxu1 %v989_v59 }
  0x38   :  { %904 = vmatpush3.bf16.msra.mxu0 %v990_v60 }
  0x39   :  { %905 = vmatprep.subr.bf16.mxu0 %v992_v61  ;;  %926 = vmatpush3.bf16.msra.mxu1 %v991_v62 }
  0x3a   :  { %927 = vmatprep.subr.bf16.mxu1 %v993_v63 }
  0x3c   :  { %906 = vmatpush3.bf16.msra.mxu0 %v994_v0 }
  0x3d   :  { %907 = vmatprep.subr.bf16.mxu0 %v996_v1  ;;  %928 = vmatpush3.bf16.msra.mxu1 %v995_v2 }
  0x3e   :  { %929 = vmatprep.subr.bf16.mxu1 %v997_v3 }
  0x40   :  { %908 = vmatpush3.bf16.msra.mxu0 %v998_v4 }
  0x41   :  { %909 = vmatprep.subr.bf16.mxu0 %v1000_v5  ;;  %930 = vmatpush3.bf16.msra.mxu1 %v999_v6 }
  0x42   :  { %931 = vmatprep.subr.bf16.mxu1 %v1001_v7 }
  0x44   :  { %910 = vmatpush3.bf16.msra.mxu0 %v1002_v8 }
  0x45   :  { %911 = vmatprep.subr.bf16.mxu0 %v1004_v9  ;;  %932 = vmatpush3.bf16.msra.mxu1 %v1003_v10 }
  0x46   :  { %933 = vmatprep.subr.bf16.mxu1 %v1005_v11 }
  0x48   :  { %912 = vmatpush3.bf16.msra.mxu0 %v1006_v12 }
  0x49   :  { %913 = vmatprep.subr.bf16.mxu0 %v1008_v13  ;;  %934 = vmatpush3.bf16.msra.mxu1 %v1007_v14 }
  0x4a   :  { %935 = vmatprep.subr.bf16.mxu1 %v1009_v15 }
  0x4c   :  { %914 = vmatpush3.bf16.msra.mxu0 %v1010_v16 }
  0x4d   :  { %936 = vmatpush3.bf16.msra.mxu1 %v1011_v18 }
  0x4f   :  { %723 = vmatmul.mubr.bf16.vlgmr.msra.gmra.mxu0 %v199_v17 }
  0x50   :  { %763 = vmatmul.mubr.bf16.vlgmr.msra.gmra.mxu1 %v215_v19 }
  0xef   :  { %v871_v20 = vpop.f32.mrf.mxu0 }
  0xf0   :  { %v893_v21 = vpop.f32.mrf.mxu1 }
  0xf1   :  { %v872_v22 = vpop.f32.mrf.mxu0 }
  0xf2   :  { %v894_v23 = vpop.f32.mrf.mxu1  ;;  %v873_v28 = vadd.f32 %v872_v22, %v871_v20 }
  0xf3   :  { %v874_v24 = vpop.f32.mrf.mxu0  ;;  %v895_v31 = vadd.f32 %v894_v23, %v893_v21 }
  0xf4   :  { %v896_v25 = vpop.f32.mrf.mxu1  ;;  %v645_v30 = vadd.f32 %v873_v28, %v790_v29 }
  0xf5   :  { %v875_v26 = vpop.f32.mrf.mxu0 }
  0xf6   :  { %v897_v27 = vpop.f32.mrf.mxu1  ;;  %v685_v35 = vadd.f32 %v895_v31, %v645_v30 }
 0x10f   :  { %v915_v32 = vpop.f32.mrf.mxu0 }
 0x110   :  { %v937_v33 = vpop.f32.mrf.mxu1 }
 0x111   :  { %v916_v34 = vpop.f32.mrf.mxu0 }
 0x112   :  { %v917_v36 = vadd.f32 %v916_v34, %v915_v32  ;;  %v938_v37 = vpop.f32.mrf.mxu1 }
 0x113   :  { %v918_v38 = vpop.f32.mrf.mxu0  ;;  %v939_v40 = vadd.f32 %v938_v37, %v937_v33 }
 0x114   :  { %v725_v39 = vadd.f32 %v917_v36, %v685_v35  ;;  %v940_v41 = vpop.f32.mrf.mxu1 }
 0x115   :  { %v919_v42 = vpop.f32.mrf.mxu0 }
 0x116   :  { %v765_v43 = vadd.f32 %v939_v40, %v725_v39  ;;  %v941_v44 = vpop.f32.mrf.mxu1 }
 0x118   :  { %v771_v45 = vmul.f32 0.70710677, %v765_v43  ;;  %v770_v47 = vmul.f32 0.5, %v765_v43 }
 0x11a   :  { %1012 = verf.f32 %v771_v45 }
 0x127   :  { %v1013_v46 = vpop.eup %1012 }
 0x128   :  { %v773_v48 = vadd.f32 1.0, %v1013_v46 }
 0x12a   :  { %v774_v49 = vmul.f32 %v773_v48, %v770_v47 }
 0x12c   :  { %775 = vrot.lane.b32.xlu0 %v774_v49, %s1039_s18  ;;  %783 = vst [vmem:[%s1105_s4] sm:$0x3] %v774_v49 }
 0x19e   :  { %v776_v50 = vpop.permute.xlu0 %775 }
 0x19f   :  { %v778_v51 = vmul.f32 0.5, %v776_v50 }
 0x1a1   :  { %v779_v52 = vmul.f32 1.442695, %v778_v51 }
 0x1a3   :  { %1014 = vpow2.f32 %v779_v52 }
 0x1b0   :  { %v1015_v54 = vpop.eup %1014 }
 0x1b1   :  { %v781_v55 = vmul.f32 %v1015_v54, %v777_v53 }
 0x1b3   :  { %v782_v56 = vadd.f32 %v781_v55, %v774_v49 }
 0x1b5   :  { %784 = vst [vmem:[%s1105_s4 + $0x2] sm:$0x3] %v782_v56 }
 0x1b6   :  { %789 = vsyncpa [#allocation3], 1 }

</bundles_post_ra>
